<compile_context>
chip_gen: v7x
topology: tpu7x:2x2x1
jax: 0.10.0
libtpu: 0.0.40
codegen_flags: <defaults>
</compile_context>

<pallas_src>
import functools

import numpy as np
import jax
import jax.numpy as jnp
from jax.experimental import pallas as pl
from jax.experimental.pallas import tpu as pltpu


def _round_up(x, m):
    return ((x + m - 1) // m) * m


def fused_cnn_maxpool_kernel(x_ref, w_ref, b_ref, o_ref, *,
                             kernel_sizes, seq_len, c_in, dim, c_pad):
    # x_ref: (bn, T*C_in)        raw input tile, time-major flattened
    # w_ref: (k_max*C_in, c_pad) bank-fused weights (zero-padded taps / lanes)
    # b_ref: (1, c_pad)          bank-fused bias
    # o_ref: (bn, c_pad)         fused, lane-padded output
    k_max = max(kernel_sizes)
    k_min = min(kernel_sizes)
    n_pos = seq_len - k_min + 1            # positions needed by the narrowest bank

    acc = None
    for t in range(n_pos):                 # static unroll: one MXU matmul / position
        # Contraction width available at this position (tail positions are narrower;
        # the dropped RHS rows are zero for every bank that is still valid here).
        k_width = min(k_max, seq_len - t) * c_in
        lhs = x_ref[:, t * c_in: t * c_in + k_width]          # (bn, k_width)
        rhs = w_ref[:k_width, :]                               # (k_width, c_pad)
        val = jnp.dot(lhs, rhs, preferred_element_type=jnp.float32)  # (bn, c_pad)

        # Banks whose receptive field would run past the sequence end are invalid at
        # this position; mask them to -inf so they can never win the temporal max.
        if any(t + k > seq_len for k in kernel_sizes):
            lane = jax.lax.broadcasted_iota(jnp.int32, (1, c_pad), 1)
            bad = None
            for i, k in enumerate(kernel_sizes):
                if t + k > seq_len:
                    b_i = (lane >= i * dim) & (lane < (i + 1) * dim)
                    bad = b_i if bad is None else (bad | b_i)
            val = jnp.where(bad, -jnp.inf, val)

        acc = val if acc is None else jnp.maximum(acc, val)    # running max (VPU)

    # Bias after max (identity: max(a + c) == max(a) + c); single lane-dense store.
    o_ref[...] = (acc + b_ref[...]).astype(o_ref.dtype)


def cnn_maxpool_forward(inputs, weights, biases, *, bn=256):
    """inputs: (B, S, T, dim_input); weights[i]: (k_i, C_in, dim); biases[i]: (1, dim).

    Returns (B, S, dim * len(weights)), matching the PyTorch CNNMaxpool forward.
    """
    B, S, T, C_in = inputs.shape
    kernel_sizes = tuple(int(w.shape[0]) for w in weights)
    dim = int(weights[0].shape[2])
    n_k = len(kernel_sizes)
    k_max = max(kernel_sizes)

    N = B * S
    K_col = k_max * C_in                   # fused contraction width
    C_out_total = dim * n_k
    C_pad = _round_up(C_out_total, 128)    # lane-dense output slab

    # ---- input layout: a FREE reshape, no im2col / no extra HBM pass -------------
    x_flat = inputs.reshape(N, T * C_in)

    # ---- bank-fused weights / bias (tiny, VMEM-resident) -------------------------
    # w_fused[j*C_in + c, i*dim + o] = weights[i][j, c, o]; zero elsewhere.
    w_fused = jnp.zeros((K_col, C_pad), jnp.float32)
    b_fused = jnp.zeros((1, C_pad), jnp.float32)
    for i, (w, b) in enumerate(zip(weights, biases)):
        k = int(w.shape[0])
        wf = jnp.asarray(w, jnp.float32).reshape(k * C_in, dim)
        w_fused = w_fused.at[:k * C_in, i * dim:(i + 1) * dim].set(wf)
        b_fused = b_fused.at[:, i * dim:(i + 1) * dim].set(
            jnp.asarray(b, jnp.float32).reshape(1, dim))

    # ---- tile N: multiple of 8, capped so the grid has >= 4 steps when possible ---
    bn_cap = _round_up(max(1, -(-N // 4)), 8)
    bn = _round_up(max(8, min(int(bn), bn_cap)), 8)
    N_pad = _round_up(N, bn)
    if N_pad != N:
        x_flat = jnp.pad(x_flat, ((0, N_pad - N), (0, 0)))

    kernel = functools.partial(
        fused_cnn_maxpool_kernel,
        kernel_sizes=kernel_sizes, seq_len=T, c_in=C_in, dim=dim, c_pad=C_pad)

    out = pl.pallas_call(
        kernel,
        out_shape=jax.ShapeDtypeStruct((N_pad, C_pad), inputs.dtype),
        grid=(N_pad // bn,),
        in_specs=[
            pl.BlockSpec((bn, T * C_in), lambda i: (i, 0)),
            pl.BlockSpec((K_col, C_pad), lambda i: (0, 0)),   # resident weights
            pl.BlockSpec((1, C_pad), lambda i: (0, 0)),       # resident bias
        ],
        out_specs=pl.BlockSpec((bn, C_pad), lambda i: (i, 0)),
        compiler_params=pltpu.CompilerParams(
            dimension_semantics=("parallel",)),
    )(x_flat, w_fused, b_fused)

    # Minor trailing slice; downstream code could consume the (N_pad, C_pad) slab
    # directly to avoid this extra pass.
    out = out[:N, :C_out_total]
    return out.reshape(B, S, C_out_total)


def reference_forward(inputs, weights, biases):
    """Pure-JAX reference mirroring the PyTorch forward (per-tap conv, bias, max)."""
    B, S, T, C_in = inputs.shape
    x = inputs.reshape(B * S, T, C_in)
    outs = []
    for w, b in zip(weights, biases):
        k = w.shape[0]
        l_out = T - k + 1
        acc = jnp.zeros((B * S, l_out, w.shape[2]), jnp.float32)
        for j in range(k):
            acc = acc + jnp.einsum("ntc,co->nto", x[:, j:j + l_out, :], w[j])
        acc = acc + b[0][None, None, :]
        outs.append(jnp.max(acc, axis=1))
    return jnp.concatenate(outs, axis=-1).reshape(B, S, -1)


if __name__ == "__main__":
    # Module config (synthetic, deterministic init).
    B, S, T = 2, 8, 16          # batch, seq, token length
    dim_input = 4               # input channels
    config = {"dim": 32, "kernels": [2, 3, 4]}

    key = jax.random.PRNGKey(0)
    key, kx = jax.random.split(key)
    inputs = jax.random.normal(kx, (B, S, T, dim_input), dtype=jnp.float32)

    weights, biases = [], []
    for k_sz in config["kernels"]:
        key, kw, kb = jax.random.split(key, 3)
        # Equivalent of nn.Conv1d(dim_input, dim, k).weight (C_out, C_in, k),
        # stored here as (k, C_in, C_out) for the channels-last kernel.
        w = jax.random.normal(kw, (k_sz, dim_input, config["dim"]),
                              dtype=jnp.float32) * 0.1
        b = jax.random.normal(kb, (1, config["dim"]), dtype=jnp.float32) * 0.1
        weights.append(w)
        biases.append(b)

    out = cnn_maxpool_forward(inputs, weights, biases, bn=256)
    out = jax.block_until_ready(out)

    ref = reference_forward(inputs, weights, biases)
    assert out.shape == (B, S, config["dim"] * len(config["kernels"]))
    assert jnp.allclose(out, ref, atol=1e-4, rtol=1e-4)

    print("KERNEL_OK")
</pallas_src>

<mosaic_0001>
module attributes {stable_mosaic.version = 11 : i64} {
  func.func @fused_cnn_maxpool_kernel(%arg0: i32, %arg1: memref<8x64xf32, #tpu.memory_space<vmem>>, %arg2: memref<16x128xf32, #tpu.memory_space<vmem>>, %arg3: memref<1x128xf32, #tpu.memory_space<vmem>>, %arg4: memref<8x128xf32, #tpu.memory_space<vmem>>) attributes {dimension_semantics = [#tpu.dimension_semantics<parallel>], iteration_bounds = array<i64: 2>, scalar_prefetch = 0 : i64, scratch_operands = 0 : i64, tpu.core_type = #tpu.core_type<tc>, window_params = [{transform_indices = @transform_0, window_bounds = array<i64: 8, 64>}, {pipeline_mode = #tpu.pipeline_mode<synchronous>, transform_indices = @transform_1, window_bounds = array<i64: 16, 128>}, {pipeline_mode = #tpu.pipeline_mode<synchronous>, transform_indices = @transform_2, window_bounds = array<i64: 1, 128>}, {transform_indices = @transform_3, window_bounds = array<i64: 8, 128>}]} {
    %c0 = arith.constant 0 : index
    %c0_0 = arith.constant 0 : index
    %0 = vector.load %arg1[%c0, %c0_0] : memref<8x64xf32, #tpu.memory_space<vmem>>, vector<8x16xf32>
    %c0_1 = arith.constant 0 : index
    %c0_2 = arith.constant 0 : index
    %1 = vector.load %arg2[%c0_1, %c0_2] : memref<16x128xf32, #tpu.memory_space<vmem>>, vector<16x128xf32>
    %cst = arith.constant dense<0.000000e+00> : vector<8x128xf32>
    %2 = tpu.matmul %0, %1, %cst {dimension_numbers = #tpu.dot_dimension_numbers<[1], [0], [0], [1], [0, 0, 1, 1], [], []>} : vector<8x16xf32>, vector<16x128xf32>, vector<8x128xf32> -> vector<8x128xf32>
    %c0_3 = arith.constant 0 : index
    %c4 = arith.constant 4 : index
    %3 = vector.load %arg1[%c0_3, %c4] : memref<8x64xf32, #tpu.memory_space<vmem>>, vector<8x16xf32>
    %c0_4 = arith.constant 0 : index
    %c0_5 = arith.constant 0 : index
    %4 = vector.load %arg2[%c0_4, %c0_5] : memref<16x128xf32, #tpu.memory_space<vmem>>, vector<16x128xf32>
    %cst_6 = arith.constant dense<0.000000e+00> : vector<8x128xf32>
    %5 = tpu.matmul %3, %4, %cst_6 {dimension_numbers = #tpu.dot_dimension_numbers<[1], [0], [0], [1], [0, 0, 1, 1], [], []>} : vector<8x16xf32>, vector<16x128xf32>, vector<8x128xf32> -> vector<8x128xf32>
    %6 = arith.maximumf %2, %5 : vector<8x128xf32>
    %c0_7 = arith.constant 0 : index
    %c8 = arith.constant 8 : index
    %7 = vector.load %arg1[%c0_7, %c8] : memref<8x64xf32, #tpu.memory_space<vmem>>, vector<8x16xf32>
    %c0_8 = arith.constant 0 : index
    %c0_9 = arith.constant 0 : index
    %8 = vector.load %arg2[%c0_8, %c0_9] : memref<16x128xf32, #tpu.memory_space<vmem>>, vector<16x128xf32>
    %cst_10 = arith.constant dense<0.000000e+00> : vector<8x128xf32>
    %9 = tpu.matmul %7, %8, %cst_10 {dimension_numbers = #tpu.dot_dimension_numbers<[1], [0], [0], [1], [0, 0, 1, 1], [], []>} : vector<8x16xf32>, vector<16x128xf32>, vector<8x128xf32> -> vector<8x128xf32>
    %10 = arith.maximumf %6, %9 : vector<8x128xf32>
    %c0_11 = arith.constant 0 : index
    %c12 = arith.constant 12 : index
    %11 = vector.load %arg1[%c0_11, %c12] : memref<8x64xf32, #tpu.memory_space<vmem>>, vector<8x16xf32>
    %c0_12 = arith.constant 0 : index
    %c0_13 = arith.constant 0 : index
    %12 = vector.load %arg2[%c0_12, %c0_13] : memref<16x128xf32, #tpu.memory_space<vmem>>, vector<16x128xf32>
    %cst_14 = arith.constant dense<0.000000e+00> : vector<8x128xf32>
    %13 = tpu.matmul %11, %12, %cst_14 {dimension_numbers = #tpu.dot_dimension_numbers<[1], [0], [0], [1], [0, 0, 1, 1], [], []>} : vector<8x16xf32>, vector<16x128xf32>, vector<8x128xf32> -> vector<8x128xf32>
    %14 = arith.maximumf %10, %13 : vector<8x128xf32>
    %c0_15 = arith.constant 0 : index
    %c16 = arith.constant 16 : index
    %15 = vector.load %arg1[%c0_15, %c16] : memref<8x64xf32, #tpu.memory_space<vmem>>, vector<8x16xf32>
    %c0_16 = arith.constant 0 : index
    %c0_17 = arith.constant 0 : index
    %16 = vector.load %arg2[%c0_16, %c0_17] : memref<16x128xf32, #tpu.memory_space<vmem>>, vector<16x128xf32>
    %cst_18 = arith.constant dense<0.000000e+00> : vector<8x128xf32>
    %17 = tpu.matmul %15, %16, %cst_18 {dimension_numbers = #tpu.dot_dimension_numbers<[1], [0], [0], [1], [0, 0, 1, 1], [], []>} : vector<8x16xf32>, vector<16x128xf32>, vector<8x128xf32> -> vector<8x128xf32>
    %18 = arith.maximumf %14, %17 : vector<8x128xf32>
    %c0_19 = arith.constant 0 : index
    %c20 = arith.constant 20 : index
    %19 = vector.load %arg1[%c0_19, %c20] : memref<8x64xf32, #tpu.memory_space<vmem>>, vector<8x16xf32>
    %c0_20 = arith.constant 0 : index
    %c0_21 = arith.constant 0 : index
    %20 = vector.load %arg2[%c0_20, %c0_21] : memref<16x128xf32, #tpu.memory_space<vmem>>, vector<16x128xf32>
    %cst_22 = arith.constant dense<0.000000e+00> : vector<8x128xf32>
    %21 = tpu.matmul %19, %20, %cst_22 {dimension_numbers = #tpu.dot_dimension_numbers<[1], [0], [0], [1], [0, 0, 1, 1], [], []>} : vector<8x16xf32>, vector<16x128xf32>, vector<8x128xf32> -> vector<8x128xf32>
    %22 = arith.maximumf %18, %21 : vector<8x128xf32>
    %c0_23 = arith.constant 0 : index
    %c24 = arith.constant 24 : index
    %23 = vector.load %arg1[%c0_23, %c24] : memref<8x64xf32, #tpu.memory_space<vmem>>, vector<8x16xf32>
    %c0_24 = arith.constant 0 : index
    %c0_25 = arith.constant 0 : index
    %24 = vector.load %arg2[%c0_24, %c0_25] : memref<16x128xf32, #tpu.memory_space<vmem>>, vector<16x128xf32>
    %cst_26 = arith.constant dense<0.000000e+00> : vector<8x128xf32>
    %25 = tpu.matmul %23, %24, %cst_26 {dimension_numbers = #tpu.dot_dimension_numbers<[1], [0], [0], [1], [0, 0, 1, 1], [], []>} : vector<8x16xf32>, vector<16x128xf32>, vector<8x128xf32> -> vector<8x128xf32>
    %26 = arith.maximumf %22, %25 : vector<8x128xf32>
    %c0_27 = arith.constant 0 : index
    %c28 = arith.constant 28 : index
    %27 = vector.load %arg1[%c0_27, %c28] : memref<8x64xf32, #tpu.memory_space<vmem>>, vector<8x16xf32>
    %c0_28 = arith.constant 0 : index
    %c0_29 = arith.constant 0 : index
    %28 = vector.load %arg2[%c0_28, %c0_29] : memref<16x128xf32, #tpu.memory_space<vmem>>, vector<16x128xf32>
    %cst_30 = arith.constant dense<0.000000e+00> : vector<8x128xf32>
    %29 = tpu.matmul %27, %28, %cst_30 {dimension_numbers = #tpu.dot_dimension_numbers<[1], [0], [0], [1], [0, 0, 1, 1], [], []>} : vector<8x16xf32>, vector<16x128xf32>, vector<8x128xf32> -> vector<8x128xf32>
    %30 = arith.maximumf %26, %29 : vector<8x128xf32>
    %c0_31 = arith.constant 0 : index
    %c32 = arith.constant 32 : index
    %31 = vector.load %arg1[%c0_31, %c32] : memref<8x64xf32, #tpu.memory_space<vmem>>, vector<8x16xf32>
    %c0_32 = arith.constant 0 : index
    %c0_33 = arith.constant 0 : index
    %32 = vector.load %arg2[%c0_32, %c0_33] : memref<16x128xf32, #tpu.memory_space<vmem>>, vector<16x128xf32>
    %cst_34 = arith.constant dense<0.000000e+00> : vector<8x128xf32>
    %33 = tpu.matmul %31, %32, %cst_34 {dimension_numbers = #tpu.dot_dimension_numbers<[1], [0], [0], [1], [0, 0, 1, 1], [], []>} : vector<8x16xf32>, vector<16x128xf32>, vector<8x128xf32> -> vector<8x128xf32>
    %34 = arith.maximumf %30, %33 : vector<8x128xf32>
    %c0_35 = arith.constant 0 : index
    %c36 = arith.constant 36 : index
    %35 = vector.load %arg1[%c0_35, %c36] : memref<8x64xf32, #tpu.memory_space<vmem>>, vector<8x16xf32>
    %c0_36 = arith.constant 0 : index
    %c0_37 = arith.constant 0 : index
    %36 = vector.load %arg2[%c0_36, %c0_37] : memref<16x128xf32, #tpu.memory_space<vmem>>, vector<16x128xf32>
    %cst_38 = arith.constant dense<0.000000e+00> : vector<8x128xf32>
    %37 = tpu.matmul %35, %36, %cst_38 {dimension_numbers = #tpu.dot_dimension_numbers<[1], [0], [0], [1], [0, 0, 1, 1], [], []>} : vector<8x16xf32>, vector<16x128xf32>, vector<8x128xf32> -> vector<8x128xf32>
    %38 = arith.maximumf %34, %37 : vector<8x128xf32>
    %c0_39 = arith.constant 0 : index
    %c40 = arith.constant 40 : index
    %39 = vector.load %arg1[%c0_39, %c40] : memref<8x64xf32, #tpu.memory_space<vmem>>, vector<8x16xf32>
    %c0_40 = arith.constant 0 : index
    %c0_41 = arith.constant 0 : index
    %40 = vector.load %arg2[%c0_40, %c0_41] : memref<16x128xf32, #tpu.memory_space<vmem>>, vector<16x128xf32>
    %cst_42 = arith.constant dense<0.000000e+00> : vector<8x128xf32>
    %41 = tpu.matmul %39, %40, %cst_42 {dimension_numbers = #tpu.dot_dimension_numbers<[1], [0], [0], [1], [0, 0, 1, 1], [], []>} : vector<8x16xf32>, vector<16x128xf32>, vector<8x128xf32> -> vector<8x128xf32>
    %42 = arith.maximumf %38, %41 : vector<8x128xf32>
    %c0_43 = arith.constant 0 : index
    %c44 = arith.constant 44 : index
    %43 = vector.load %arg1[%c0_43, %c44] : memref<8x64xf32, #tpu.memory_space<vmem>>, vector<8x16xf32>
    %c0_44 = arith.constant 0 : index
    %c0_45 = arith.constant 0 : index
    %44 = vector.load %arg2[%c0_44, %c0_45] : memref<16x128xf32, #tpu.memory_space<vmem>>, vector<16x128xf32>
    %cst_46 = arith.constant dense<0.000000e+00> : vector<8x128xf32>
    %45 = tpu.matmul %43, %44, %cst_46 {dimension_numbers = #tpu.dot_dimension_numbers<[1], [0], [0], [1], [0, 0, 1, 1], [], []>} : vector<8x16xf32>, vector<16x128xf32>, vector<8x128xf32> -> vector<8x128xf32>
    %46 = arith.maximumf %42, %45 : vector<8x128xf32>
    %c0_47 = arith.constant 0 : index
    %c48 = arith.constant 48 : index
    %47 = vector.load %arg1[%c0_47, %c48] : memref<8x64xf32, #tpu.memory_space<vmem>>, vector<8x16xf32>
    %c0_48 = arith.constant 0 : index
    %c0_49 = arith.constant 0 : index
    %48 = vector.load %arg2[%c0_48, %c0_49] : memref<16x128xf32, #tpu.memory_space<vmem>>, vector<16x128xf32>
    %cst_50 = arith.constant dense<0.000000e+00> : vector<8x128xf32>
    %49 = tpu.matmul %47, %48, %cst_50 {dimension_numbers = #tpu.dot_dimension_numbers<[1], [0], [0], [1], [0, 0, 1, 1], [], []>} : vector<8x16xf32>, vector<16x128xf32>, vector<8x128xf32> -> vector<8x128xf32>
    %50 = arith.maximumf %46, %49 : vector<8x128xf32>
    %c0_51 = arith.constant 0 : index
    %c52 = arith.constant 52 : index
    %51 = vector.load %arg1[%c0_51, %c52] : memref<8x64xf32, #tpu.memory_space<vmem>>, vector<8x12xf32>
    %c0_52 = arith.constant 0 : index
    %c0_53 = arith.constant 0 : index
    %52 = vector.load %arg2[%c0_52, %c0_53] : memref<16x128xf32, #tpu.memory_space<vmem>>, vector<12x128xf32>
    %cst_54 = arith.constant dense<0.000000e+00> : vector<8x128xf32>
    %53 = tpu.matmul %51, %52, %cst_54 {dimension_numbers = #tpu.dot_dimension_numbers<[1], [0], [0], [1], [0, 0, 1, 1], [], []>} : vector<8x12xf32>, vector<12x128xf32>, vector<8x128xf32> -> vector<8x128xf32>
    %54 = tpu.iota {dimensions = array<i32: 1>} : vector<1x128xi32>
    %c64_i32 = arith.constant 64 : i32
    %55 = vector.broadcast %c64_i32 : i32 to vector<1x128xi32>
    %56 = arith.cmpi sge, %54, %55 : vector<1x128xi32>
    %c96_i32 = arith.constant 96 : i32
    %57 = vector.broadcast %c96_i32 : i32 to vector<1x128xi32>
    %58 = arith.cmpi slt, %54, %57 : vector<1x128xi32>
    %59 = arith.andi %56, %58 : vector<1x128xi1>
    %cst_55 = arith.constant 0xFF800000 : f32
    %60 = vector.shape_cast %59 : vector<1x128xi1> to vector<1x128xi1>
    %61 = vector.broadcast %60 : vector<1x128xi1> to vector<8x128xi1>
    %62 = vector.broadcast %cst_55 : f32 to vector<8x128xf32>
    %63 = arith.select %61, %62, %53 : vector<8x128xi1>, vector<8x128xf32>
    %64 = arith.maximumf %50, %63 : vector<8x128xf32>
    %c0_56 = arith.constant 0 : index
    %c56 = arith.constant 56 : index
    %65 = vector.load %arg1[%c0_56, %c56] : memref<8x64xf32, #tpu.memory_space<vmem>>, vector<8x8xf32>
    %c0_57 = arith.constant 0 : index
    %c0_58 = arith.constant 0 : index
    %66 = vector.load %arg2[%c0_57, %c0_58] : memref<16x128xf32, #tpu.memory_space<vmem>>, vector<8x128xf32>
    %cst_59 = arith.constant dense<0.000000e+00> : vector<8x128xf32>
    %67 = tpu.matmul %65, %66, %cst_59 {dimension_numbers = #tpu.dot_dimension_numbers<[1], [0], [0], [1], [0, 0, 1, 1], [], []>} : vector<8x8xf32>, vector<8x128xf32>, vector<8x128xf32> -> vector<8x128xf32>
    %68 = tpu.iota {dimensions = array<i32: 1>} : vector<1x128xi32>
    %c32_i32 = arith.constant 32 : i32
    %69 = vector.broadcast %c32_i32 : i32 to vector<1x128xi32>
    %70 = arith.cmpi sge, %68, %69 : vector<1x128xi32>
    %c64_i32_60 = arith.constant 64 : i32
    %71 = vector.broadcast %c64_i32_60 : i32 to vector<1x128xi32>
    %72 = arith.cmpi slt, %68, %71 : vector<1x128xi32>
    %73 = arith.andi %70, %72 : vector<1x128xi1>
    %c64_i32_61 = arith.constant 64 : i32
    %74 = vector.broadcast %c64_i32_61 : i32 to vector<1x128xi32>
    %75 = arith.cmpi sge, %68, %74 : vector<1x128xi32>
    %c96_i32_62 = arith.constant 96 : i32
    %76 = vector.broadcast %c96_i32_62 : i32 to vector<1x128xi32>
    %77 = arith.cmpi slt, %68, %76 : vector<1x128xi32>
    %78 = arith.andi %75, %77 : vector<1x128xi1>
    %79 = arith.ori %73, %78 : vector<1x128xi1>
    %cst_63 = arith.constant 0xFF800000 : f32
    %80 = vector.shape_cast %79 : vector<1x128xi1> to vector<1x128xi1>
    %81 = vector.broadcast %80 : vector<1x128xi1> to vector<8x128xi1>
    %82 = vector.broadcast %cst_63 : f32 to vector<8x128xf32>
    %83 = arith.select %81, %82, %67 : vector<8x128xi1>, vector<8x128xf32>
    %84 = arith.maximumf %64, %83 : vector<8x128xf32>
    %c0_64 = arith.constant 0 : index
    %c0_65 = arith.constant 0 : index
    %85 = vector.load %arg3[%c0_64, %c0_65] : memref<1x128xf32, #tpu.memory_space<vmem>>, vector<1x128xf32>
    %86 = vector.broadcast %85 : vector<1x128xf32> to vector<8x128xf32>
    %87 = arith.addf %84, %86 : vector<8x128xf32>
    %c0_66 = arith.constant 0 : index
    %c0_67 = arith.constant 0 : index
    %88 = vector.load %arg4[%c0_66, %c0_67] : memref<8x128xf32, #tpu.memory_space<vmem>>, vector<8x128xf32>
    tpu.vector_store %arg4[%c0_66, %c0_67], %87 {strides = array<i32>} : memref<8x128xf32, #tpu.memory_space<vmem>>, vector<8x128xf32>,
    return
  }
  func.func @transform_0(%arg0: i32) -> (i32, i32) {
    %c0_i32 = arith.constant 0 : i32
    %c0_i32_0 = arith.constant 0 : i32
    return %arg0, %c0_i32 : i32, i32
  }
  func.func @transform_1(%arg0: i32) -> (i32, i32) {
    %c0_i32 = arith.constant 0 : i32
    %c0_i32_0 = arith.constant 0 : i32
    %c0_i32_1 = arith.constant 0 : i32
    return %c0_i32, %c0_i32_0 : i32, i32
  }
  func.func @transform_2(%arg0: i32) -> (i32, i32) {
    %c0_i32 = arith.constant 0 : i32
    %c0_i32_0 = arith.constant 0 : i32
    %c0_i32_1 = arith.constant 0 : i32
    return %c0_i32, %c0_i32_0 : i32, i32
  }
  func.func @transform_3(%arg0: i32) -> (i32, i32) {
    %c0_i32 = arith.constant 0 : i32
    %c0_i32_0 = arith.constant 0 : i32
    return %arg0, %c0_i32 : i32, i32
  }
}

</mosaic_0001>

<bundles_post_ra>
// kernel: tpu_custom_call.1
= control target key start
LH: loop header
LB: loop body
LE: loop exit
PB: predicated region body
PF: predicated region fallthrough
CT: control target
= control target key end

     0   :  { %8 = vsyncpa [#allocation3], 0  ;;  %s2207_s0 = inlined_call_operand.hbm [shape: f32[16,64], index: 0, kind: input, shape index: {}]   ;;  %s2208_s1 = inlined_call_operand.hbm [shape: f32[16,128], index: 1, kind: input, shape index: {}]   ;;  %s2209_s2 = inlined_call_operand.vmem [shape: f32[1,128], index: 2, kind: input, shape index: {}]   ;;  %s2210_s3 = inlined_call_operand.hbm [shape: f32[16,128], index: 3, kind: output, shape index: {}]  }
   0x1   :  { %10 = vsyncpa [#allocation3 + $0x1], 0 }
   0x2   :  { %11 = vsyncpa [#allocation6], 0 }
   0x3   :  { %12 = vsyncpa [#allocation4], 0 }
   0x4   :  { %14 = vsyncpa [#allocation4 + $0x1], 0  ;;  %s1926_s12 = smov 0   ;;  %s1928_s13 = smov 0  }
   0x5   :  { %s1930_s14 = smov 0   ;;  %s1932_s15 = smov 0  }
   0x6 LB: > { %s1947_s16 = sadd.s32 4294967295, %s1881_s15   ;;  %s1455_s17 = sadd.s32 4294967294, %s1881_s15   ;;  %s1881_s15 = sphi %s1932_s15, %s2230_s15   ;;  %s1877_s14 = sphi %s1930_s14, %s2229_s14   ;;  %s1873_s13 = sphi %s1928_s13, %s2228_s13   ;;  %s1869_s12 = sphi %s1926_s12, %s2227_s12  }
   0x7   : > { %p40_p0 = scmp.ne.s32.totalorder %s1873_s13, %s1869_s12  ;;  %p2211_p1 = scmp.eq.s32.totalorder %s1947_s16, 0 }
   0x8   : > { %p112_p3 = scmp.eq.s32.totalorder %s1455_s17, 1  ;;  %p1456_p5 = scmp.ge.s32.totalorder %s1881_s15, 1 }
   0x9   : > { %p1956_p4 = por %p2211_p1, %p40_p0  ;;  %p119_p7 = scmp.lt.s32.totalorder %s1881_s15, 3 }
   0xa   : > { %p1961_p6 = por %p112_p3, %p40_p0  ;;  %s1883_s21 = smov [#allocation5]  }
   0xb   : > { %s2214_s18 = scalar_select %p1956_p4, 1, 0 }
   0xc   : > { %s2215_s19 = scalar_select %p1961_p6, 1, 0 }
   0xd   : > { %p1966_p8 = pnand %p1456_p5, %p119_p7  ;;  %s131_s22 = sshll.u32 %s1883_s21, 4  ;;  %s1970_s22 = int_to_ptr.vmem [resolvable:$true] %s131_s22 }
   0xe   : > { %s1982_s24 = sadd.s32 1, %s1881_s15   ;;  %s27_s25 = sadd.s32 1, %s1877_s14 }
   0xf   : > { %s2216_s20 = scalar_select %p1966_p8, 1, 0 }
  0x10   : > { %p1684_p9 = pneg %p1966_p8  ;;  %s24_s26 = ssub.s32 %s1881_s15, %s1982_s24 }
  0x11   : > { %s1753_s29 = scalar_lea.hbm %s2208_s1, 256 }
  0x12   : > { %p1977_p11 = pnand %p1684_p9, %p2211_p1  ;;  %p1754_p12 = scmp.ne.s32.totalorder %s2208_s1, %s1753_s29 }
  0x13   : > { %p1760_p5 = scmp.lt.u32.totalorder %s1753_s29, %s2208_s1 }
  0x14   : > { %p1755_p13 = pneg %p1977_p11 }
  0x16   : > { %p1756_p0 = pnand %p1755_p13, %p1754_p12 }
  0x18   : > { %p1757_p3 = pneg %p1756_p0 }
  0x1a   : > { %p1762_p7 = pnand %p1760_p5, %p1757_p3 }
  0x1c   : > { %1765 = shalt.err (!%p1762_p7)
}
  0x1d   : > { %s1766_s7 = scalar_lea.vmem %s1970_s22, 256  ;;  %p1774_p2 = scmp.lt.s32.totalorder %s1970_s22, %s1970_s22 }
  0x1e   : > { %p1767_p9 = scmp.ne.s32.totalorder %s1970_s22, %s1766_s7  ;;  %p1775_p6 = scmp.lt.s32.totalorder %s1766_s7, %s1766_s7 }
  0x20   : > { %p1769_p10 = pnand %p1767_p9, %p1755_p13  ;;  %p1776_p4 = por %p1775_p6, %p1774_p2 }
  0x22   : > { %p1770_p1 = pneg %p1769_p10 }
  0x24   : > { %p1777_p8 = pnand %p1776_p4, %p1770_p1 }
  0x26   : > { %1780 = shalt.err (!%p1777_p8)
}
  0x27   : > { %s1884_s8 = smov 128   ;;  %s1885_s9 = smov 8  }
  0x28   : > { %1687 = dma.hbm_to_vmem [thread:$0]  (!%p1977_p11), %s2208_s1, 256, %s1970_s22, [#allocation6], %s1884_s8, %s1884_s8, %s1885_s9  }
  0x29   : > { %p25_p2 = scmp.eq.s32.totalorder %s24_s26, 0  ;;  %p34_p1 = scmp.ne.s32.totalorder %s1877_s14, %s1873_s13 }
  0x2a   : > { %p35_p4 = scmp.eq.s32.totalorder %s1881_s15, 0  ;;  %p1697_p6 = scmp.lt.s32.totalorder %s1881_s15, 2 }
  0x2b   : > { %s2013_s17 = scalar_select %p25_p2, %s1877_s14, %s27_s25  }
  0x2c   : > { %p36_p8 = por %p35_p4, %p34_p1  ;;  %p2218_p10 = scmp.eq.s32.totalorder %s1947_s16, 1 }
  0x2d   : > { %s148_s27 = sand.u32 1, %s1877_s14   ;;  %s1460_s28 = sshll.u32 %s1881_s15, 7 }
  0x2e   : > { %p2017_p12 = por %p2218_p10, %p34_p1  ;;  %s1459_s29 = sshll.u32 %s148_s27, 3 }
  0x2f   : > { %s2026_s4 = scalar_lea.hbm %s2207_s0, %s1460_s28  ;;  %s152_s22 = scalar_lea.vmem [#allocation2], %s1459_s29 }
  0x30   : > { %s159_s25 = sshll.u32 %s152_s22, 4  ;;  %p2028_p11 = pnand %p1697_p6, %p36_p8  ;;  %s2032_s25 = int_to_ptr.vmem [resolvable:$true] %s159_s25 }
  0x31   : > { %s149_s5 = scalar_lea.sflag [#allocation3], %s148_s27  ;;  %s1781_s6 = scalar_lea.hbm %s2026_s4, 128 }
  0x32   : > { %p1782_p13 = scmp.ne.s32.totalorder %s2026_s4, %s1781_s6  ;;  %p1783_p0 = pneg %p2028_p11 }
  0x33   : > { %s1786_s9 = scalar_lea.hbm %s2207_s0, 256  ;;  %p1787_p7 = scmp.lt.u32.totalorder %s2026_s4, %s2207_s0 }
  0x34   : > { %p1784_p3 = pnand %p1783_p0, %p1782_p13  ;;  %p1788_p9 = scmp.lt.u32.totalorder %s1786_s9, %s1781_s6 }
  0x35   : > { %p1790_p1 = scmp.lt.u32.totalorder %s1781_s6, %s2026_s4 }
  0x36   : > { %p1785_p5 = pneg %p1784_p3  ;;  %p1789_p2 = por %p1788_p9, %p1787_p7 }
  0x38   : > { %p1791_p4 = por %p1790_p1, %p1789_p2 }
  0x3a   : > { %p1792_p6 = pnand %p1791_p4, %p1785_p5 }
  0x3c   : > { %1795 = shalt.err (!%p1792_p6)
}
  0x3d   : > { %s1796_s27 = scalar_lea.vmem %s2032_s25, 128  ;;  %s1886_s28 = smov [#allocation2]  }
  0x3e   : > { %p1797_p8 = scmp.ne.s32.totalorder %s2032_s25, %s1796_s27  ;;  %s1801_s29 = sshll.u32 %s1886_s28, 4  ;;  %s1802_s29 = int_to_ptr.vmem [resolvable:$false] %s1801_s29 }
  0x3f   : > { %s1803_s23 = scalar_lea.vmem %s1802_s29, 256  ;;  %p1804_p3 = scmp.lt.s32.totalorder %s2032_s25, %s1802_s29 }
  0x40   : > { %p1799_p10 = pnand %p1797_p8, %p1783_p0  ;;  %p1805_p7 = scmp.lt.s32.totalorder %s1803_s23, %s1796_s27 }
  0x42   : > { %p1800_p13 = pneg %p1799_p10  ;;  %p1806_p9 = por %p1805_p7, %p1804_p3 }
  0x44   : > { %p1807_p2 = pnand %p1806_p9, %p1800_p13 }
  0x46   : > { %1810 = shalt.err (!%p1807_p2)
}
  0x47   : > { %1691 = dma.hbm_to_vmem [thread:$0]  (!%p2028_p11), %s2026_s4, 128, %s2032_s25, %s149_s5  }
  0x48   : > { %p2221_p5 = scmp.ne.s32.totalorder %s2216_s20, 0 }
  0x49   : > { %s2062_s30 = sand.u32 (!%p2221_p5), 1, %s1873_s13   ;;  %p2222_p0 = scmp.ne.s32.totalorder (!%p2221_p5), %s2214_s18, 0 }
  0x4a   : > { %168 = sbr.rel (%p2221_p5) target bundleno = 462 (0x1ce), region = 32  ;;  %s1462_s22 = sshll.u32 (!%p2221_p5), %s2062_s30, 3 }
  0x4b   : > { %s171_s6 = scalar_lea.sflag (!%p2221_p5), [#allocation3], %s2062_s30  ;;  %s174_s7 = scalar_lea.vmem (!%p2221_p5), [#allocation2], %s1462_s22 }
  0x51   : > { %1856 = dma.done.wait (%p2222_p0), %s171_s6, 128  }
  0x52   : > { %1858 = vsyncadd (%p2222_p0), %s171_s6, 4294967168  ;;  %p2223_p11 = scmp.eq.s32.totalorder %s1947_s16, 0 }
  0x54   : > { %1860 = dma.done.wait (%p2223_p11), [#allocation6], 256   ;;  %p2224_p1 = pmov %p2223_p11 }
  0x55   : > { %v1887_v0 = vmov 0.0|0.0   ;;  %vm1888_vm0 = vmmov 0   ;;  %v1889_v1 = vmov 0.0   ;;  %v201_v2 = vld [vmem:[%s174_s7] sm:$0xff]  ;;  %v2082_v3 = vld [vmem:[#allocation5] sm:$0xff]  ;;  %v203_v4 = vld [vmem:[#allocation5 + $0x8] sm:$0xff]  ;;  %v1259_v39 = vlaneseq }
  0x56   : > { %1862 = vsyncadd (%p2224_p1), [#allocation6], 4294967040  ;;  %1633 = vmatprep.subr.bf16.mxu0 %v1887_v0  ;;  %1636 = vmatprep.subr.bf16.mxu1 %v1887_v0  ;;  %s1890_s18 = smov 124   ;;  %s1891_s20 = smov 116   ;;  %v2085_v5 = vpack.c.bf16 %v203_v4, %v2082_v3  ;;  %vm204_vm1 = vcmask 130048   ;;  %vm1185_vm2 = vcmask 1043456  }
  0x57   : > { %1534 = vmatprep.mubr.msk.f32.mxu0 %vm1888_vm0, %v1889_v1  ;;  %1541 = vmatprep.mubr.msk.f32.mxu1 %vm1888_vm0, %v1889_v1  ;;  %s1892_s4 = smov 120   ;;  %s1893_s25 = smov 112   ;;  %v1179_v14 = vld [vmem:[#allocation5 + $0x8] sm:$0xf]  ;;  %vm1904_vm3 = vmmov 1   ;;  %vm1182_vm5 = vcmask 97280  }
  0x58   : > { %278 = vrot.lane.b32.xlu0 %v201_v2, %s1890_s18  ;;  %428 = vrot.lane.b32.xlu1 %v201_v2, %s1891_s20  ;;  %s1894_s26 = smov 108   ;;  %s1895_s5 = smov 104   ;;  %v1673_v17 = vpack.c.bf16 %v1179_v14, %v2082_v3  ;;  %vm1674_vm4 = vmpackc.low %vm1185_vm2, %vm1904_vm3  ;;  %vm1271_vm6 = vcmask 64512   ;;  %v1260_v46 = vand.u32 127, %v1259_v39  ;;  %v1481_v4 = vld [vmem:[%s2209_s2] ss:$0 sm:$0xff] }
  0x59   : > { %1635 = vmatpush3.bf16.msra.mxu0 %v2085_v5  ;;  %1638 = vmatpush3.bf16.msra.mxu1 %v2085_v5  ;;  %s1896_s8 = smov 100   ;;  %s1897_s9 = smov 96  }
  0x5a   : > { %1639 = vmatprep.subr.bf16.mxu0 %v1887_v0  ;;  %1642 = vmatprep.subr.bf16.mxu1 %v1887_v0  ;;  %s1898_s10 = smov 92   ;;  %s1899_s11 = smov 88   ;;  %vm1261_vm7 = vcmp.ge.s32.totalorder %v1260_v46, 64  ;;  %vm1262_vm8 = vcmp.lt.s32.totalorder %v1260_v46, 96  ;;  %vm1344_vm9 = vcmp.ge.s32.totalorder %v1260_v46, 32  ;;  %vm1345_vm10 = vcmp.lt.s32.totalorder %v1260_v46, 64 }
  0x5b   : > { %s1900_s27 = smov 84   ;;  %s1901_s28 = smov 80   ;;  %vm1263_vm11 = vmand %vm1261_vm7, %vm1262_vm8 }
  0x5c   : > { %353 = vrot.lane.b32.xlu0 %v201_v2, %s1892_s4  ;;  %503 = vrot.lane.b32.xlu1 %v201_v2, %s1893_s25  ;;  %s1902_s29 = smov 76   ;;  %s1903_s23 = smov 72   ;;  %vm1346_vm12 = vmand %vm1344_vm9, %vm1345_vm10 }
  0x5d   : > { %1535 = vmatmul.mubr.msk.f32.vlgmr.msra.gmra.mrb[0].mxu0 %vm204_vm1, %v201_v2  ;;  %vm1347_vm13 = vmor %vm1346_vm12, %vm1263_vm11  ;;  %s1483_s18 = sshll.u32 %s1947_s16, 7  ;;  %s200_s20 = scalar_lea.vmem [#allocation7], %s1462_s22 }
  0x5e   : > { %1641 = vmatpush3.bf16.msra.mxu0 %v2085_v5  ;;  %1548 = vmatprep.mubr.msk.f32.mxu0 %vm1888_vm0, %v1889_v1  ;;  %s1375_s4 = sshll.u32 %s200_s20, 4  ;;  %s1905_s16 = smov [#allocation7]   ;;  %s2165_s4 = int_to_ptr.vmem [resolvable:$true] %s1375_s4 }
  0x5f   : > { %1645 = vmatprep.subr.bf16.mxu0 %v1887_v0  ;;  %s1815_s22 = sshll.u32 %s1905_s16, 4  ;;  %s1816_s22 = int_to_ptr.vmem [resolvable:$false] %s1815_s22 }
  0x60   : > { %578 = vrot.lane.b32.xlu0 %v201_v2, %s1894_s26  ;;  %653 = vrot.lane.b32.xlu1 %v201_v2, %s1895_s5  ;;  %s2163_s5 = scalar_lea.hbm %s2210_s3, %s1483_s18  ;;  %p1818_p10 = scmp.lt.s32.totalorder %s2165_s4, %s1816_s22 }
  0x64   : > { %728 = vrot.lane.b32.xlu0 %v201_v2, %s1896_s8  ;;  %803 = vrot.lane.b32.xlu1 %v201_v2, %s1897_s9  ;;  %s1362_s8 = scalar_lea.sflag [#allocation4], %s2062_s30  ;;  %s1811_s9 = scalar_lea.vmem %s2165_s4, 128 }
  0x65   : > { %p1812_p4 = scmp.ne.s32.totalorder %s2165_s4, %s1811_s9 }
  0x67   : > { %p1813_p6 = pnand %p1812_p4, %p2017_p12 }
  0x68   : > { %878 = vrot.lane.b32.xlu0 %v201_v2, %s1898_s10  ;;  %953 = vrot.lane.b32.xlu1 %v201_v2, %s1899_s11  ;;  %s1817_s10 = scalar_lea.vmem %s1816_s22, 256 }
  0x69   : > { %p1814_p8 = pneg %p1813_p6  ;;  %p1819_p13 = scmp.lt.s32.totalorder %s1817_s10, %s1811_s9 }
  0x6b   : > { %p1820_p3 = por %p1819_p13, %p1818_p10 }
  0x6c   : > { %1028 = vrot.lane.b32.xlu0 %v201_v2, %s1900_s27  ;;  %1103 = vrot.lane.b32.xlu1 %v201_v2, %s1901_s28 }
  0x6d   : > { %p1821_p7 = pnand %p1820_p3, %p1814_p8 }
  0x70   : > { %1180 = vrot.lane.b32.xlu0 %v201_v2, %s1902_s29  ;;  %1269 = vrot.lane.b32.xlu1 %v201_v2, %s1903_s23 }
  0xca   : > { %v279_v6 = vpop.permute.xlu0 %278  ;;  %v429_v7 = vpop.permute.xlu1 %428 }
  0xcb   : > { %1542 = vmatmul.mubr.msk.f32.vlgmr.msra.gmra.mrb[0].mxu1 %vm204_vm1, %v279_v6 }
  0xcc   : > { %1644 = vmatpush3.bf16.msra.mxu1 %v2085_v5  ;;  %1555 = vmatprep.mubr.msk.f32.mxu1 %vm1888_vm0, %v1889_v1 }
  0xcd   : > { %1648 = vmatprep.subr.bf16.mxu1 %v1887_v0 }
  0xce   : > { %v354_v8 = vpop.permute.xlu0 %353  ;;  %v504_v9 = vpop.permute.xlu1 %503 }
  0xcf   : > { %1549 = vmatmul.mubr.msk.f32.vlgmr.msra.gmra.mrb[2].mxu0 %vm204_vm1, %v354_v8  ;;  %1556 = vmatmul.mubr.msk.f32.vlgmr.msra.gmra.mrb[2].mxu1 %vm204_vm1, %v429_v7 }
  0xd0   : > { %1647 = vmatpush3.bf16.msra.mxu0 %v2085_v5  ;;  %1650 = vmatpush3.bf16.msra.mxu1 %v2085_v5 }
  0xd1   : > { %1562 = vmatprep.mubr.msk.f32.mxu0 %vm1888_vm0, %v1889_v1  ;;  %1651 = vmatprep.subr.bf16.mxu0 %v1887_v0 }
  0xd2   : > { %1569 = vmatprep.mubr.msk.f32.mxu1 %vm1888_vm0, %v1889_v1  ;;  %v579_v10 = vpop.permute.xlu0 %578  ;;  %1654 = vmatprep.subr.bf16.mxu1 %v1887_v0  ;;  %v654_v11 = vpop.permute.xlu1 %653 }
  0xd3   : > { %1563 = vmatmul.mubr.msk.f32.vlgmr.msra.gmra.mrb[4].mxu0 %vm204_vm1, %v504_v9  ;;  %1570 = vmatmul.mubr.msk.f32.vlgmr.msra.gmra.mrb[4].mxu1 %vm204_vm1, %v579_v10 }
  0xd4   : > { %1653 = vmatpush3.bf16.msra.mxu0 %v2085_v5  ;;  %1656 = vmatpush3.bf16.msra.mxu1 %v2085_v5 }
  0xd5   : > { %1576 = vmatprep.mubr.msk.f32.mxu0 %vm1888_vm0, %v1889_v1  ;;  %1657 = vmatprep.subr.bf16.mxu0 %v1887_v0 }
  0xd6   : > { %1583 = vmatprep.mubr.msk.f32.mxu1 %vm1888_vm0, %v1889_v1  ;;  %v729_v12 = vpop.permute.xlu0 %728  ;;  %1660 = vmatprep.subr.bf16.mxu1 %v1887_v0  ;;  %v804_v13 = vpop.permute.xlu1 %803 }
  0xd7   : > { %1577 = vmatmul.mubr.msk.f32.vlgmr.msra.gmra.mrb[6].mxu0 %vm204_vm1, %v654_v11  ;;  %1584 = vmatmul.mubr.msk.f32.vlgmr.msra.gmra.mrb[6].mxu1 %vm204_vm1, %v729_v12 }
  0xd8   : > { %1659 = vmatpush3.bf16.msra.mxu0 %v2085_v5  ;;  %1662 = vmatpush3.bf16.msra.mxu1 %v2085_v5 }
  0xd9   : > { %1590 = vmatprep.mubr.msk.f32.mxu0 %vm1888_vm0, %v1889_v1  ;;  %1663 = vmatprep.subr.bf16.mxu0 %v1887_v0 }
  0xda   : > { %1597 = vmatprep.mubr.msk.f32.mxu1 %vm1888_vm0, %v1889_v1  ;;  %v879_v15 = vpop.permute.xlu0 %878  ;;  %1666 = vmatprep.subr.bf16.mxu1 %v1887_v0  ;;  %v954_v16 = vpop.permute.xlu1 %953 }
  0xdb   : > { %1591 = vmatmul.mubr.msk.f32.vlgmr.msra.gmra.mrb[8].mxu0 %vm204_vm1, %v804_v13  ;;  %1598 = vmatmul.mubr.msk.f32.vlgmr.msra.gmra.mrb[8].mxu1 %vm204_vm1, %v879_v15 }
  0xdc   : > { %1665 = vmatpush3.bf16.msra.mxu0 %v2085_v5  ;;  %1668 = vmatpush3.bf16.msra.mxu1 %v2085_v5 }
  0xdd   : > { %1604 = vmatprep.mubr.msk.f32.mxu0 %vm1888_vm0, %v1889_v1  ;;  %1669 = vmatprep.subr.bf16.mxu0 %v1887_v0 }
  0xde   : > { %1611 = vmatprep.mubr.msk.f32.mxu1 %vm1888_vm0, %v1889_v1  ;;  %v1029_v18 = vpop.permute.xlu0 %1028  ;;  %1672 = vmatprep.subr.bf16.mxu1 %v1887_v0  ;;  %v1104_v19 = vpop.permute.xlu1 %1103 }
  0xdf   : > { %1605 = vmatmul.mubr.msk.f32.vlgmr.msra.gmra.mrb[10].mxu0 %vm204_vm1, %v954_v16  ;;  %1612 = vmatmul.mubr.msk.f32.vlgmr.msra.gmra.mrb[10].mxu1 %vm204_vm1, %v1029_v18 }
  0xe0   : > { %1671 = vmatpush3.bf16.msra.mxu0 %v2085_v5  ;;  %1675 = vmatpush3.bf16.msk.msra.mxu1 %vm1674_vm4, %v1673_v17 }
  0xe1   : > { %1618 = vmatprep.mubr.msk.f32.mxu0 %vm1888_vm0, %v1889_v1  ;;  %1628 = vmatprep.subr.mxu0 %v1889_v1 }
  0xe2   : > { %1625 = vmatprep.mubr.msk.f32.mxu1 %vm1888_vm0, %v1889_v1  ;;  %v1181_v20 = vpop.permute.xlu0 %1180  ;;  %v1270_v21 = vpop.permute.xlu1 %1269 }
  0xe3   : > { %1619 = vmatmul.mubr.msk.f32.vlgmr.msra.gmra.mrb[12].mxu0 %vm204_vm1, %v1104_v19  ;;  %1626 = vmatmul.mubr.msk.f32.vlgmr.msra.gmra.mrb[12].mxu1 %vm1182_vm5, %v1181_v20 }
  0xe4   : > { %1629 = vmatpush3.msra.mxu0 %v2082_v3  ;;  %1630 = vmatprep.mubr.msk.f32.mxu0 %vm1888_vm0, %v1889_v1 }
  0xe7   : > { %1631 = vmatmul.mubr.msk.f32.vlgmr.msra.gmra.mrb[14].mxu0 %vm1271_vm6, %v1270_v21 }
 0x130   : > { %v274_v22 = vpop.f32.mrb[0].mxu0 }
 0x131   : > { %v1536_v23 = vpop.f32.mrb[1].mxu0 }
 0x19e   : > { %v348_v24 = vpop.f32.mrb[0].mxu1 }
 0x19f   : > { %v352_v25 = vmax.f32 %v274_v22, %v348_v24  ;;  %v1543_v26 = vpop.f32.mrb[1].mxu1 }
 0x1a2   : > { %v423_v27 = vpop.f32.mrb[2].mxu0  ;;  %v498_v28 = vpop.f32.mrb[2].mxu1 }
 0x1a3   : > { %v427_v29 = vmax.f32 %v352_v25, %v423_v27  ;;  %v1550_v30 = vpop.f32.mrb[3].mxu0  ;;  %v1557_v31 = vpop.f32.mrb[3].mxu1 }
 0x1a5   : > { %v502_v32 = vmax.f32 %v427_v29, %v498_v28 }
 0x1a6   : > { %v573_v33 = vpop.f32.mrb[4].mxu0  ;;  %v648_v34 = vpop.f32.mrb[4].mxu1 }
 0x1a7   : > { %v577_v35 = vmax.f32 %v502_v32, %v573_v33  ;;  %v1564_v36 = vpop.f32.mrb[5].mxu0  ;;  %v1571_v37 = vpop.f32.mrb[5].mxu1 }
 0x1a9   : > { %v652_v38 = vmax.f32 %v577_v35, %v648_v34 }
 0x1aa   : > { %v723_v40 = vpop.f32.mrb[6].mxu0  ;;  %v798_v41 = vpop.f32.mrb[6].mxu1 }
 0x1ab   : > { %v727_v42 = vmax.f32 %v652_v38, %v723_v40  ;;  %v1578_v43 = vpop.f32.mrb[7].mxu0  ;;  %v1585_v44 = vpop.f32.mrb[7].mxu1 }
 0x1ad   : > { %v802_v45 = vmax.f32 %v727_v42, %v798_v41 }
 0x1ae   : > { %v873_v47 = vpop.f32.mrb[8].mxu0  ;;  %v948_v48 = vpop.f32.mrb[8].mxu1 }
 0x1af   : > { %v877_v49 = vmax.f32 %v802_v45, %v873_v47  ;;  %v1592_v50 = vpop.f32.mrb[9].mxu0  ;;  %v1599_v51 = vpop.f32.mrb[9].mxu1 }
 0x1b1   : > { %v952_v52 = vmax.f32 %v877_v49, %v948_v48 }
 0x1b2   : > { %v1023_v53 = vpop.f32.mrb[10].mxu0  ;;  %v1098_v54 = vpop.f32.mrb[10].mxu1 }
 0x1b3   : > { %v1027_v55 = vmax.f32 %v952_v52, %v1023_v53  ;;  %v1606_v56 = vpop.f32.mrb[11].mxu0  ;;  %v1613_v57 = vpop.f32.mrb[11].mxu1 }
 0x1b5   : > { %v1102_v58 = vmax.f32 %v1027_v55, %v1098_v54 }
 0x1b6   : > { %v1173_v59 = vpop.f32.mrb[12].mxu0  ;;  %v1255_v60 = vpop.f32.mrb[12].mxu1 }
 0x1b7   : > { %v1177_v61 = vmax.f32 %v1102_v58, %v1173_v59  ;;  %v1620_v62 = vpop.f32.mrb[13].mxu0  ;;  %v1266_v63 = vsel %vm1263_vm11, -inf, %v1255_v60  ;;  %v1627_v0 = vpop.f32.mrb[13].mxu1 }
 0x1b9   : > { %v1267_v1 = vmax.f32 %v1177_v61, %v1266_v63 }
 0x1ba   : > { %v1340_v2 = vpop.f32.mrb[14].mxu0 }
 0x1bb   : > { %v1350_v3 = vsel %vm1347_vm13, -inf, %v1340_v2  ;;  %v1632_v5 = vpop.f32.mrb[15].mxu0 }
 0x1bc   : > { %v1351_v6 = vmax.f32 %v1267_v1, %v1350_v3 }
 0x1be   : > { %v1359_v7 = vadd.f32 %v1481_v4, %v1351_v6 }
 0x1c0   : > { %1360 = vst [vmem:[%s200_s20] sm:$0xff] %v1359_v7 }
 0x1c1   : > { %1824 = shalt.err (!%p1821_p7)
}
 0x1c2   : > { %s1825_s30 = scalar_lea.hbm %s2163_s5, 128  ;;  %s1829_s28 = scalar_lea.hbm %s2210_s3, 256 }
 0x1c3   : > { %p1826_p9 = scmp.ne.s32.totalorder %s2163_s5, %s1825_s30  ;;  %p1830_p0 = scmp.lt.u32.totalorder %s2163_s5, %s2210_s3 }
 0x1c4   : > { %p1831_p11 = scmp.lt.u32.totalorder %s1829_s28, %s1825_s30  ;;  %p1833_p4 = scmp.lt.u32.totalorder %s1825_s30, %s2163_s5 }
 0x1c5   : > { %p1827_p2 = pnand %p1826_p9, %p2017_p12 }
 0x1c6   : > { %p1832_p1 = por %p1831_p11, %p1830_p0 }
 0x1c7   : > { %p1828_p5 = pneg %p1827_p2 }
 0x1c8   : > { %p1834_p6 = por %p1833_p4, %p1832_p1 }
 0x1ca   : > { %p1835_p8 = pnand %p1834_p6, %p1828_p5 }
 0x1cc   : > { %1838 = shalt.err (!%p1835_p8)
}
 0x1cd   : > { %1682 = dma.vmem_to_hbm [thread:$0]  (%p2017_p12), %s2165_s4, 128, %s2163_s5, %s1362_s8  }
 0x1ce PF: > { %s1387_s6 = sand.u32 1, %s1869_s12   ;;  %p2225_p10 = scmp.ne.s32.totalorder %s2215_s19, 0 }
 0x1cf   : > { %p2226_p13 = scmp.ge.s32.totalorder %s1881_s15, 2  ;;  %s1388_s7 = scalar_lea.sflag [#allocation4], %s1387_s6 }
 0x1d1   : > { %p1693_p3 = pnand %p2226_p13, %p2225_p10 }
 0x1d3   : > { %1864 = dma.done.wait (!%p1693_p3), %s1388_s7, 128  }
 0x1d4   : > { %1866 = vsyncadd (!%p1693_p3), %s1388_s7, 4294967168  ;;  %p17_p7 = scmp.ge.s32.totalorder %s1982_s24, 4   ;;  %s2227_s12 = smov %s1873_s13 }
 0x1d5   : > { %s2228_s13 = smov %s1877_s14  ;;  %s2229_s14 = smov %s2013_s17 }
 0x1d6   : > { %s2230_s15 = smov %s1982_s24  ;;  %19 = sbr.rel (!%p17_p7) target bundleno = 6 (0x6), region = 81 }
 0x1dd   :  { %1393 = vsyncpa [#allocation3], 1 }
 0x1de   :  { %1395 = vsyncpa [#allocation3 + $0x1], 1 }
 0x1df   :  { %1396 = vsyncpa [#allocation6], 1 }
 0x1e0   :  { %1397 = vsyncpa [#allocation4], 1 }
 0x1e1   :  { %1399 = vsyncpa [#allocation4 + $0x1], 1 }

</bundles_post_ra>
